<compile_context>
chip_gen: v7x
topology: tpu7x:2x2x1
jax: 0.10.0
libtpu: 0.0.40
codegen_flags: <defaults>
</compile_context>

<pallas_src>
import functools
import math

import jax
import jax.numpy as jnp
from jax.experimental import pallas as pl
from jax.experimental.pallas import tpu as pltpu


def _round_up(x, m):
    return ((x + m - 1) // m) * m


def _pick_block_b(B, Q, T, V, itemsize, vmem_budget_bytes=24 * 1024 * 1024):
    """Choose how many batch elements to process per grid step."""
    # Per-element VMEM footprint after (sublane, lane) = (8, 128) tile padding.
    # Note the [T, V] values slice pads its V=32 lane dim to 128 (4x raw bytes).
    per_elt = (
        _round_up(Q, 8) * _round_up(T, 128)      # keys tile
        + _round_up(T, 8) * _round_up(V, 128)    # values tile (lane padded)
        + 3 * _round_up(max(Q, T, V), 128)       # query / attn / ctx rows
    ) * itemsize
    # x2 for the double-buffered input/output pipeline.
    bb = max(8, (vmem_budget_bytes // (2 * per_elt) // 8) * 8)
    # Keep the grid length >= 2 when possible so the "parallel" batch axis can
    # shard across v7x's two TensorCores (and still pipelines on 1-TC chips).
    half = _round_up(max(1, -(-B // 2)), 8)
    return max(8, min(bb, half))


def _attention_kernel(q_ref, k_ref, v_ref, ctx_ref, attn_ref, *, scale):
    # q_ref:    [BB, 1, Q]
    # k_ref:    [BB, Q, T]
    # v_ref:    [BB, T, V]
    # ctx_ref:  [BB, 1, V]
    # attn_ref: [BB, 1, T]
    # Fold 1/sqrt(Q) into q (Q-wide multiply instead of T-wide on the score).
    q = q_ref[...] * scale                                    # [BB, 1, Q]

    # score = q @ keys per batch element (batched M=1 matmul on the MXU).
    score = jnp.einsum(
        "biq,bqt->bit", q, k_ref[...],
        preferred_element_type=jnp.float32)                   # [BB, 1, T]

    # Numerically stable softmax along T.
    m = jnp.max(score, axis=-1, keepdims=True)                # [BB, 1, 1]
    e = jnp.exp(score - m)                                    # EUP
    denom = jnp.sum(e, axis=-1, keepdims=True)                # [BB, 1, 1]
    attn = e * pl.reciprocal(denom, approx=True)              # EUP approx recip

    # context = attn @ values per batch element (batched MXU matmul; contraction
    # is on the natural [T, V] row axis, so no XLU transpose is introduced).
    ctx = jnp.einsum(
        "bit,btv->biv", attn.astype(v_ref.dtype), v_ref[...],
        preferred_element_type=jnp.float32)                   # [BB, 1, V]

    attn_ref[...] = attn.astype(attn_ref.dtype)
    ctx_ref[...] = ctx.astype(ctx_ref.dtype)


def attention(query, keys, values, *, block_b=None):
    """query: [B, Q], keys: [B, Q, T], values: [B, T, V]
    returns (context [B, V], attention [B, 1, T]) -- same as the torch module."""
    B, Q = query.shape
    _, _, T = keys.shape
    _, _, V = values.shape
    scale = 1.0 / math.sqrt(Q)

    bb = block_b if block_b is not None else _pick_block_b(
        B, Q, T, V, jnp.dtype(query.dtype).itemsize)
    b_pad = pl.cdiv(B, bb) * bb

    q3 = query.reshape(B, 1, Q)      # torch's unsqueeze(1)
    if b_pad != B:
        # Pad the tail block with zeros; padded rows compute a finite softmax
        # (uniform over zeros) and are sliced off below.
        pad = b_pad - B
        q3 = jnp.pad(q3, ((0, pad), (0, 0), (0, 0)))
        keys = jnp.pad(keys, ((0, pad), (0, 0), (0, 0)))
        values = jnp.pad(values, ((0, pad), (0, 0), (0, 0)))

    kernel = functools.partial(_attention_kernel, scale=scale)

    ctx, attn = pl.pallas_call(
        kernel,
        out_shape=(
            jax.ShapeDtypeStruct((b_pad, 1, V), query.dtype),
            jax.ShapeDtypeStruct((b_pad, 1, T), query.dtype),
        ),
        grid_spec=pltpu.PrefetchScalarGridSpec(
            num_scalar_prefetch=0,
            grid=(b_pad // bb,),
            in_specs=[
                pl.BlockSpec((bb, 1, Q), lambda i: (i, 0, 0)),
                pl.BlockSpec((bb, Q, T), lambda i: (i, 0, 0)),
                pl.BlockSpec((bb, T, V), lambda i: (i, 0, 0)),
            ],
            out_specs=[
                pl.BlockSpec((bb, 1, V), lambda i: (i, 0, 0)),
                pl.BlockSpec((bb, 1, T), lambda i: (i, 0, 0)),
            ],
        ),
        compiler_params=pltpu.CompilerParams(
            dimension_semantics=("parallel",),
            vmem_limit_bytes=32 * 1024 * 1024,
        ),
    )(q3, keys, values)

    return ctx[:B, 0, :], attn[:B]


def _reference(query, keys, values):
    B, Q = query.shape
    score = jnp.einsum("bq,bqt->bt", query, keys) / jnp.sqrt(jnp.float32(Q))
    attn = jax.nn.softmax(score, axis=-1)
    ctx = jnp.einsum("bt,btv->bv", attn, values)
    return ctx, attn[:, None, :]


if __name__ == "__main__":
    # Small shapes consistent with the module: query_dim=32, seq=128, value_dim=32.
    # B=16 with BB=8 exercises batch blocking and a 2-step (megacore-shardable) grid.
    B, Q, T, V = 16, 32, 128, 32
    key = jax.random.PRNGKey(0)
    kq, kk, kv = jax.random.split(key, 3)
    query = jax.random.normal(kq, (B, Q), dtype=jnp.float32)
    keys = jax.random.normal(kk, (B, Q, T), dtype=jnp.float32)
    values = jax.random.normal(kv, (B, T, V), dtype=jnp.float32)

    ctx, attn = attention(query, keys, values)
    jax.block_until_ready((ctx, attn))

    ctx_ref, attn_ref = _reference(query, keys, values)
    assert ctx.shape == (B, V) and attn.shape == (B, 1, T)
    # Tolerances allow for the EUP approximate reciprocal in the softmax.
    assert jnp.allclose(ctx, ctx_ref, atol=2e-3, rtol=2e-3)
    assert jnp.allclose(attn, attn_ref, atol=2e-3, rtol=2e-3)

    print("KERNEL_OK")
</pallas_src>

<mosaic_0001>
module attributes {stable_mosaic.version = 11 : i64} {
  func.func @_attention_kernel(%arg0: i32, %arg1: memref<8x1x32xf32, #tpu.memory_space<vmem>>, %arg2: memref<8x32x128xf32, #tpu.memory_space<vmem>>, %arg3: memref<8x128x32xf32, #tpu.memory_space<vmem>>, %arg4: memref<8x1x32xf32, #tpu.memory_space<vmem>>, %arg5: memref<8x1x128xf32, #tpu.memory_space<vmem>>) attributes {dimension_semantics = [#tpu.dimension_semantics<parallel>], iteration_bounds = array<i64: 2>, scalar_prefetch = 0 : i64, scratch_operands = 0 : i64, tpu.core_type = #tpu.core_type<tc>, window_params = [{transform_indices = @transform_0, window_bounds = array<i64: 8, 1, 32>}, {transform_indices = @transform_1, window_bounds = array<i64: 8, 32, 128>}, {transform_indices = @transform_2, window_bounds = array<i64: 8, 128, 32>}, {transform_indices = @transform_3, window_bounds = array<i64: 8, 1, 32>}, {transform_indices = @transform_4, window_bounds = array<i64: 8, 1, 128>}]} {
    %c0 = arith.constant 0 : index
    %c0_0 = arith.constant 0 : index
    %c0_1 = arith.constant 0 : index
    %0 = vector.load %arg1[%c0, %c0_0, %c0_1] : memref<8x1x32xf32, #tpu.memory_space<vmem>>, vector<8x1x32xf32>
    %cst = arith.constant 0.176776692 : f32
    %1 = vector.broadcast %cst : f32 to vector<8x1x32xf32>
    %2 = arith.mulf %0, %1 : vector<8x1x32xf32>
    %c0_2 = arith.constant 0 : index
    %c0_3 = arith.constant 0 : index
    %c0_4 = arith.constant 0 : index
    %3 = vector.load %arg2[%c0_2, %c0_3, %c0_4] : memref<8x32x128xf32, #tpu.memory_space<vmem>>, vector<8x32x128xf32>
    "tpu.trace_start"() <{level = 10 : i32, message = "biq,bqt->bit"}> : () -> ()
    %cst_5 = arith.constant dense<0.000000e+00> : vector<8x1x128xf32>
    %4 = tpu.matmul %2, %3, %cst_5 {dimension_numbers = #tpu.dot_dimension_numbers<[2], [1], [1], [2], [0, 0, 0, 1, 1, 2], [0], [0]>} : vector<8x1x32xf32>, vector<8x32x128xf32>, vector<8x1x128xf32> -> vector<8x1x128xf32>
    "tpu.trace_stop"() : () -> ()
    %cst_6 = arith.constant dense<0xFF800000> : vector<8x1xf32>
    %5 = vector.multi_reduction <maximumf>, %4, %cst_6 [2] : vector<8x1x128xf32> to vector<8x1xf32>
    %6 = vector.shape_cast %5 : vector<8x1xf32> to vector<8x1x1xf32>
    %7 = vector.broadcast %6 : vector<8x1x1xf32> to vector<8x1x128xf32>
    %8 = arith.subf %4, %7 : vector<8x1x128xf32>
    %9 = math.exp %8 : vector<8x1x128xf32>
    %cst_7 = arith.constant dense<0.000000e+00> : vector<8x1xf32>
    %10 = vector.multi_reduction <add>, %9, %cst_7 [2] : vector<8x1x128xf32> to vector<8x1xf32>
    %11 = vector.shape_cast %10 : vector<8x1xf32> to vector<8x1x1xf32>
    %12 = tpu.reciprocal %11 {approx = true} : vector<8x1x1xf32> -> vector<8x1x1xf32>
    %13 = vector.broadcast %12 : vector<8x1x1xf32> to vector<8x1x128xf32>
    %14 = arith.mulf %9, %13 : vector<8x1x128xf32>
    %c0_8 = arith.constant 0 : index
    %c0_9 = arith.constant 0 : index
    %c0_10 = arith.constant 0 : index
    %15 = vector.load %arg3[%c0_8, %c0_9, %c0_10] : memref<8x128x32xf32, #tpu.memory_space<vmem>>, vector<8x128x32xf32>
    "tpu.trace_start"() <{level = 10 : i32, message = "bit,btv->biv"}> : () -> ()
    %cst_11 = arith.constant dense<0.000000e+00> : vector<8x1x32xf32>
    %16 = tpu.matmul %14, %15, %cst_11 {dimension_numbers = #tpu.dot_dimension_numbers<[2], [1], [1], [2], [0, 0, 0, 1, 1, 2], [0], [0]>} : vector<8x1x128xf32>, vector<8x128x32xf32>, vector<8x1x32xf32> -> vector<8x1x32xf32>
    "tpu.trace_stop"() : () -> ()
    %c0_12 = arith.constant 0 : index
    %c0_13 = arith.constant 0 : index
    %c0_14 = arith.constant 0 : index
    %17 = vector.load %arg5[%c0_12, %c0_13, %c0_14] : memref<8x1x128xf32, #tpu.memory_space<vmem>>, vector<8x1x128xf32>
    tpu.vector_store %arg5[%c0_12, %c0_13, %c0_14], %14 {strides = array<i32>} : memref<8x1x128xf32, #tpu.memory_space<vmem>>, vector<8x1x128xf32>,
    %c0_15 = arith.constant 0 : index
    %c0_16 = arith.constant 0 : index
    %c0_17 = arith.constant 0 : index
    %18 = vector.load %arg4[%c0_15, %c0_16, %c0_17] : memref<8x1x32xf32, #tpu.memory_space<vmem>>, vector<8x1x32xf32>
    tpu.vector_store %arg4[%c0_15, %c0_16, %c0_17], %16 {strides = array<i32>} : memref<8x1x32xf32, #tpu.memory_space<vmem>>, vector<8x1x32xf32>,
    return
  }
  func.func @transform_0(%arg0: i32) -> (i32, i32, i32) {
    %c0_i32 = arith.constant 0 : i32
    %c0_i32_0 = arith.constant 0 : i32
    %c0_i32_1 = arith.constant 0 : i32
    return %arg0, %c0_i32, %c0_i32_0 : i32, i32, i32
  }
  func.func @transform_1(%arg0: i32) -> (i32, i32, i32) {
    %c0_i32 = arith.constant 0 : i32
    %c0_i32_0 = arith.constant 0 : i32
    %c0_i32_1 = arith.constant 0 : i32
    return %arg0, %c0_i32, %c0_i32_0 : i32, i32, i32
  }
  func.func @transform_2(%arg0: i32) -> (i32, i32, i32) {
    %c0_i32 = arith.constant 0 : i32
    %c0_i32_0 = arith.constant 0 : i32
    %c0_i32_1 = arith.constant 0 : i32
    return %arg0, %c0_i32, %c0_i32_0 : i32, i32, i32
  }
  func.func @transform_3(%arg0: i32) -> (i32, i32, i32) {
    %c0_i32 = arith.constant 0 : i32
    %c0_i32_0 = arith.constant 0 : i32
    %c0_i32_1 = arith.constant 0 : i32
    return %arg0, %c0_i32, %c0_i32_0 : i32, i32, i32
  }
  func.func @transform_4(%arg0: i32) -> (i32, i32, i32) {
    %c0_i32 = arith.constant 0 : i32
    %c0_i32_0 = arith.constant 0 : i32
    %c0_i32_1 = arith.constant 0 : i32
    return %arg0, %c0_i32, %c0_i32_0 : i32, i32, i32
  }
}

</mosaic_0001>

<bundles_post_ra>
// kernel: tpu_custom_call.1
= control target key start
LH: loop header
LB: loop body
LE: loop exit
PB: predicated region body
PF: predicated region fallthrough
CT: control target
= control target key end

     0   :  { %10 = vsyncpa [#allocation3], 0  ;;  %s3442_s0 = inlined_call_operand.vmem [shape: f32[16,1,32], index: 0, kind: input, shape index: {}]   ;;  %s3443_s1 = inlined_call_operand.vmem [shape: f32[16,32,128], index: 1, kind: input, shape index: {}]   ;;  %s3444_s2 = inlined_call_operand.vmem [shape: f32[16,128,32], index: 2, kind: input, shape index: {}]   ;;  %s3445_s3 = inlined_call_operand.hbm [shape: f32[16,1,32], index: 3, kind: output, shape index: {0}]   ;;  %s3446_s4 = inlined_call_operand.hbm [shape: f32[16,1,128], index: 4, kind: output, shape index: {1}]  }
   0x1   :  { %12 = vsyncpa [#allocation3 + $0x1], 0 }
   0x2   :  { %13 = vsyncpa [#allocation5], 0 }
   0x3   :  { %15 = vsyncpa [#allocation5 + $0x1], 0  ;;  %s2861_s15 = smov 0   ;;  %s2863_s16 = smov 0  }
   0x4   :  { %s2865_s17 = smov 0   ;;  %s2867_s18 = smov 0  }
   0x5 LB: > { %s2882_s19 = sadd.s32 4294967295, %s2827_s18   ;;  %s1835_s20 = sadd.s32 4294967294, %s2827_s18   ;;  %s2827_s18 = sphi %s2867_s18, %s3452_s18   ;;  %s2823_s17 = sphi %s2865_s17, %s3451_s17   ;;  %s2819_s16 = sphi %s2863_s16, %s3450_s16   ;;  %s2815_s15 = sphi %s2861_s15, %s3449_s15  }
   0x6   : > { %s2886_s21 = sadd.s32 1, %s2827_s18   ;;  %s106_s22 = sadd.s32 1, %s2823_s17 }
   0x7   : > { %s103_s23 = ssub.s32 %s2827_s18, %s2886_s21  ;;  %p116_p0 = scmp.ne.s32.totalorder %s2823_s17, %s2819_s16 }
   0x8   : > { %p104_p1 = scmp.eq.s32.totalorder %s103_s23, 0  ;;  %p117_p2 = scmp.eq.s32.totalorder %s2882_s19, 1 }
   0x9   : > { %p122_p3 = scmp.ne.s32.totalorder %s2819_s16, %s2815_s15  ;;  %p123_p4 = scmp.eq.s32.totalorder %s1835_s20, 1 }
   0xa   : > { %s2897_s24 = scalar_select %p104_p1, %s2823_s17, %s106_s22  }
   0xb   : > { %p2899_p5 = por %p117_p2, %p116_p0  ;;  %p2903_p6 = por %p123_p4, %p122_p3 }
   0xc   : > { %p1838_p7 = scmp.ge.s32.totalorder %s2827_s18, 1  ;;  %p195_p8 = scmp.lt.s32.totalorder %s2827_s18, 3 }
   0xe   : > { %p196_p9 = pnand %p1838_p7, %p195_p8 }
   0xf   : > { %s1841_s27 = sshll.u32 (!%p196_p9), %s2882_s19, 3  ;;  %v2829_v0 = vmov (!%p196_p9), 0.0|0.0   ;;  %vm2830_vm0 = vmmov (!%p196_p9), 0   ;;  %v2831_v1 = vmov (!%p196_p9), 0.0   ;;  %vm306_vm1 = vcmask (!%p196_p9), 261120   ;;  %s3128_s13 = sand.u32 (!%p196_p9), 1, %s2819_s16  }
  0x10   : > { %199 = sbr.rel (%p196_p9) target bundleno = 954 (0x3ba), region = 32  ;;  %2412 = vmatprep.subr.bf16.mxu0 (!%p196_p9), %v2829_v0  ;;  %2418 = vmatprep.subr.bf16.mxu1 (!%p196_p9), %v2829_v0  ;;  %p238_p10 = scmp.lt.s32.totalorder (!%p196_p9), %s1841_s27, 15  ;;  %vm891_vm2 = vcmask (!%p196_p9), 1040384   ;;  %vm1676_vm3 = vcmask (!%p196_p9), 253952  }
  0x11   : > { %2052 = vmatprep.mubr.msk.f32.mxu0 (!%p196_p9), %vm2830_vm0, %v2831_v1  ;;  %2063 = vmatprep.mubr.msk.f32.mxu1 (!%p196_p9), %vm2830_vm0, %v2831_v1  ;;  %s1839_s14 = sshll.u32 (!%p196_p9), %s3128_s13, 3  ;;  %s1866_s23 = sshll.u32 (!%p196_p9), %s2882_s19, 7 }
  0x12   : > { %s3141_s20 = scalar_lea.vmem (!%p196_p9), [#allocation4], %s1839_s14  ;;  %s3332_s22 = scalar_lea.vmem (!%p196_p9), [#allocation2], %s1839_s14 }
  0x13   : > { %s3348_s29 = scalar_lea.hbm (!%p196_p9), %s3446_s4, %s1866_s23  ;;  %s1720_s30 = sshll.u32 (!%p196_p9), %s3141_s20, 4  ;;  %s3351_s30 = int_to_ptr.vmem [resolvable:$true] %s1720_s30 }
  0x14   : > { %s2733_s6 = scalar_lea.vmem (!%p196_p9), %s3351_s30, 128  ;;  %s2832_s7 = smov (!%p196_p9), [#allocation4]  }
  0x15   : > { %p2734_p11 = scmp.ne.s32.totalorder (!%p196_p9), %s3351_s30, %s2733_s6 }
  0x17   : > { %s3454_s27 = smov (!%p238_p10, %s1841_s27), 15  ;;  %p2735_p12 = pnand %p2734_p11, %p2899_p5 }
  0x18   : > { %s1864_s28 = sshll.u32 %s3454_s27, 5  ;;  %s2931_s8 = scalar_lea.vmem %s3442_s0, %s3454_s27 }
  0x19   : > { %s2922_s5 = scalar_lea.vmem %s3443_s1, %s1864_s28  ;;  %v258_v13 = vld [vmem:[%s2931_s8] sm:$0x1]  ;;  %v259_v15 = vld [vmem:[%s2931_s8 + $0x1] sm:$0x1]  ;;  %v260_v29 = vld [vmem:[%s2931_s8 + $0x2] sm:$0x1]  ;;  %p2736_p13 = pneg %p2735_p12 }
  0x1a   : > { %v274_v2 = vld [vmem:[%s2922_s5] sm:$0xff]  ;;  %v275_v3 = vld [vmem:[%s2922_s5 + $0x8] sm:$0xff]  ;;  %v276_v7 = vld [vmem:[%s2922_s5 + $0x10] sm:$0xff]  ;;  %v266_v20 = vmul.f32 0.17677669, %v258_v13  ;;  %s1865_s9 = sshll.u32 %s3454_s27, 7 }
  0x1b   : > { %v278_v4 = vld [vmem:[%s2922_s5 + $0x20] sm:$0xff]  ;;  %v2413_v5 = vpack.c.bf16 %v275_v3, %v274_v2  ;;  %v279_v6 = vld [vmem:[%s2922_s5 + $0x28] sm:$0xff]  ;;  %v277_v8 = vld [vmem:[%s2922_s5 + $0x18] sm:$0xff]  ;;  %v267_v21 = vmul.f32 0.17677669, %v259_v15  ;;  %s3042_s12 = scalar_lea.vmem %s3444_s2, %s1865_s9 }
  0x1c   : > { %v2419_v9 = vpack.c.bf16 %v279_v6, %v278_v4  ;;  %v280_v10 = vld [vmem:[%s2922_s5 + $0x30] sm:$0xff]  ;;  %v281_v11 = vld [vmem:[%s2922_s5 + $0x38] sm:$0xff]  ;;  %v2416_v12 = vpack.c.bf16 %v277_v8, %v276_v7  ;;  %v282_v16 = vld [vmem:[%s2922_s5 + $0x40] sm:$0xff]  ;;  %v268_v36 = vmul.f32 0.17677669, %v260_v29 }
  0x1d   : > { %2414 = vmatpush3.bf16.msra.mxu0 %v2413_v5  ;;  %v2422_v14 = vpack.c.bf16 %v281_v11, %v280_v10  ;;  %v283_v17 = vld [vmem:[%s2922_s5 + $0x48] sm:$0xff]  ;;  %v286_v18 = vld [vmem:[%s2922_s5 + $0x60] sm:$0xff]  ;;  %v284_v24 = vld [vmem:[%s2922_s5 + $0x50] sm:$0xff] }
  0x1e   : > { %2420 = vmatpush3.bf16.msra.mxu1 %v2419_v9  ;;  %2415 = vmatprep.subr.bf16.mxu0 %v2829_v0  ;;  %v287_v19 = vld [vmem:[%s2922_s5 + $0x68] sm:$0xff]  ;;  %v2425_v22 = vpack.c.bf16 %v283_v17, %v282_v16  ;;  %v285_v25 = vld [vmem:[%s2922_s5 + $0x58] sm:$0xff]  ;;  %v288_v26 = vld [vmem:[%s2922_s5 + $0x70] sm:$0xff] }
  0x1f   : > { %2421 = vmatprep.subr.bf16.mxu1 %v2829_v0  ;;  %v2431_v23 = vpack.c.bf16 %v287_v19, %v286_v18  ;;  %v289_v27 = vld [vmem:[%s2922_s5 + $0x78] sm:$0xff]  ;;  %v2428_v28 = vpack.c.bf16 %v285_v25, %v284_v24  ;;  %v261_v31 = vld [vmem:[%s2931_s8 + $0x3] sm:$0x1]  ;;  %v291_v33 = vld [vmem:[%s2922_s5 + $0x88] sm:$0xff] }
  0x20   : > { %v2434_v30 = vpack.c.bf16 %v289_v27, %v288_v26  ;;  %v290_v32 = vld [vmem:[%s2922_s5 + $0x80] sm:$0xff]  ;;  %v295_v35 = vld [vmem:[%s2922_s5 + $0xa8] sm:$0xff]  ;;  %v269_v37 = vmul.f32 0.17677669, %v261_v31  ;;  %v292_v40 = vld [vmem:[%s2922_s5 + $0x90] sm:$0xff] }
  0x21   : > { %2417 = vmatpush3.bf16.msra.mxu0 %v2416_v12  ;;  %v294_v34 = vld [vmem:[%s2922_s5 + $0xa0] sm:$0xff]  ;;  %v2437_v38 = vpack.c.bf16 %v291_v33, %v290_v32  ;;  %v293_v41 = vld [vmem:[%s2922_s5 + $0x98] sm:$0xff]  ;;  %v296_v42 = vld [vmem:[%s2922_s5 + $0xb0] sm:$0xff] }
  0x22   : > { %2423 = vmatpush3.bf16.msra.mxu1 %v2422_v14  ;;  %2424 = vmatprep.subr.bf16.mxu0 %v2829_v0  ;;  %v2443_v39 = vpack.c.bf16 %v295_v35, %v294_v34  ;;  %v297_v43 = vld [vmem:[%s2922_s5 + $0xb8] sm:$0xff]  ;;  %v2440_v44 = vpack.c.bf16 %v293_v41, %v292_v40  ;;  %v262_v45 = vld [vmem:[%s2931_s8 + $0x4] sm:$0x1]  ;;  %v263_v47 = vld [vmem:[%s2931_s8 + $0x5] sm:$0x1] }
  0x23   : > { %2430 = vmatprep.subr.bf16.mxu1 %v2829_v0  ;;  %v2446_v46 = vpack.c.bf16 %v297_v43, %v296_v42  ;;  %v298_v48 = vld [vmem:[%s2922_s5 + $0xc0] sm:$0xff]  ;;  %v299_v49 = vld [vmem:[%s2922_s5 + $0xc8] sm:$0xff]  ;;  %v270_v52 = vmul.f32 0.17677669, %v262_v45  ;;  %v271_v53 = vmul.f32 0.17677669, %v263_v47 }
  0x24   : > { %2053 = vmatmul.mubr.msk.f32.vlgmr.msra.gmra.mrb[0].mxu0 %vm306_vm1, %v266_v20  ;;  %v302_v50 = vld [vmem:[%s2922_s5 + $0xe0] sm:$0xff]  ;;  %v303_v51 = vld [vmem:[%s2922_s5 + $0xe8] sm:$0xff]  ;;  %v2449_v54 = vpack.c.bf16 %v299_v49, %v298_v48  ;;  %v300_v56 = vld [vmem:[%s2922_s5 + $0xd0] sm:$0xff] }
  0x25   : > { %2064 = vmatmul.mubr.msk.f32.vlgmr.msra.gmra.mrb[0].mxu1 %vm306_vm1, %v267_v21  ;;  %2426 = vmatpush3.bf16.msra.mxu0 %v2425_v22  ;;  %v2455_v55 = vpack.c.bf16 %v303_v51, %v302_v50  ;;  %v301_v57 = vld [vmem:[%s2922_s5 + $0xd8] sm:$0xff]  ;;  %v304_v58 = vld [vmem:[%s2922_s5 + $0xf0] sm:$0xff]  ;;  %v264_v61 = vld [vmem:[%s2931_s8 + $0x6] sm:$0x1] }
  0x26   : > { %2432 = vmatpush3.bf16.msra.mxu1 %v2431_v23  ;;  %2427 = vmatprep.subr.bf16.mxu0 %v2829_v0  ;;  %v305_v59 = vld [vmem:[%s2922_s5 + $0xf8] sm:$0xff]  ;;  %v2452_v60 = vpack.c.bf16 %v301_v57, %v300_v56  ;;  %v265_v63 = vld [vmem:[%s2931_s8 + $0x7] sm:$0x1]  ;;  %v272_v2 = vmul.f32 0.17677669, %v264_v61  ;;  %v981_v27 = vld [vmem:[%s3042_s12 + $0x8] sm:$0xff] }
  0x27   : > { %2433 = vmatprep.subr.bf16.mxu1 %v2829_v0  ;;  %2074 = vmatprep.mubr.msk.f32.mxu0 %vm2830_vm0, %v2831_v1  ;;  %v2458_v62 = vpack.c.bf16 %v305_v59, %v304_v58  ;;  %v273_v3 = vmul.f32 0.17677669, %v265_v63  ;;  %v980_v26 = vld [vmem:[%s3042_s12] sm:$0xff]  ;;  %v997_v32 = vld [vmem:[%s3042_s12 + $0x88] sm:$0xff]  ;;  %v998_v34 = vld [vmem:[%s3042_s12 + $0x90] sm:$0xff]  ;;  %s1691_s5 = scalar_lea.sflag [#allocation5], %s3128_s13 }
  0x28   : > { %2085 = vmatprep.mubr.msk.f32.mxu1 %vm2830_vm0, %v2831_v1  ;;  %v2461_v29 = vpack.c.bf16 %v981_v27, %v980_v26  ;;  %v996_v31 = vld [vmem:[%s3042_s12 + $0x80] sm:$0xff]  ;;  %v1001_v41 = vld [vmem:[%s3042_s12 + $0xa8] sm:$0xff]  ;;  %v986_v43 = vld [vmem:[%s3042_s12 + $0x30] sm:$0xff]  ;;  %s2737_s8 = sshll.u32 %s2832_s7, 4  ;;  %s2738_s8 = int_to_ptr.vmem [resolvable:$false] %s2737_s8 }
  0x29   : > { %2429 = vmatpush3.bf16.msra.mxu0 %v2428_v28  ;;  %v982_v28 = vld [vmem:[%s3042_s12 + $0x10] sm:$0xff]  ;;  %v2485_v33 = vpack.c.bf16 %v997_v32, %v996_v31  ;;  %v1000_v40 = vld [vmem:[%s3042_s12 + $0xa0] sm:$0xff]  ;;  %v1003_v47 = vld [vmem:[%s3042_s12 + $0xb8] sm:$0xff]  ;;  %s2739_s9 = scalar_lea.vmem %s2738_s8, 256  ;;  %p2740_p0 = scmp.lt.s32.totalorder %s3351_s30, %s2738_s8 }
  0x2a   : > { %2435 = vmatpush3.bf16.msra.mxu1 %v2434_v30  ;;  %2436 = vmatprep.subr.bf16.mxu0 %v2829_v0  ;;  %v983_v30 = vld [vmem:[%s3042_s12 + $0x18] sm:$0xff]  ;;  %v2491_v45 = vpack.c.bf16 %v1001_v41, %v1000_v40  ;;  %v988_v49 = vld [vmem:[%s3042_s12 + $0x40] sm:$0xff]  ;;  %v989_v50 = vld [vmem:[%s3042_s12 + $0x48] sm:$0xff]  ;;  %p2741_p1 = scmp.lt.s32.totalorder %s2739_s9, %s2733_s6 }
  0x2b   : > { %2442 = vmatprep.subr.bf16.mxu1 %v2829_v0  ;;  %v2464_v35 = vpack.c.bf16 %v983_v30, %v982_v28  ;;  %v1005_v26 = vld [vmem:[%s3042_s12 + $0xc8] sm:$0xff]  ;;  %v992_v31 = vld [vmem:[%s3042_s12 + $0x60] sm:$0xff] }
  0x2c   : > { %2075 = vmatmul.mubr.msk.f32.vlgmr.msra.gmra.mrb[2].mxu0 %vm306_vm1, %v268_v36  ;;  %v999_v36 = vld [vmem:[%s3042_s12 + $0x98] sm:$0xff]  ;;  %v993_v32 = vld [vmem:[%s3042_s12 + $0x68] sm:$0xff]  ;;  %p2742_p2 = por %p2741_p1, %p2740_p0 }
  0x2d   : > { %2086 = vmatmul.mubr.msk.f32.vlgmr.msra.gmra.mrb[2].mxu1 %vm306_vm1, %v269_v37  ;;  %2438 = vmatpush3.bf16.msra.mxu0 %v2437_v38  ;;  %v984_v37 = vld [vmem:[%s3042_s12 + $0x20] sm:$0xff]  ;;  %v985_v38 = vld [vmem:[%s3042_s12 + $0x28] sm:$0xff] }
  0x2e   : > { %2444 = vmatpush3.bf16.msra.mxu1 %v2443_v39  ;;  %2439 = vmatprep.subr.bf16.mxu0 %v2829_v0  ;;  %v2488_v39 = vpack.c.bf16 %v999_v36, %v998_v34  ;;  %v2467_v42 = vpack.c.bf16 %v985_v38, %v984_v37  ;;  %v2479_v34 = vpack.c.bf16 %v993_v32, %v992_v31  ;;  %v994_v37 = vld [vmem:[%s3042_s12 + $0x70] sm:$0xff]  ;;  %v995_v38 = vld [vmem:[%s3042_s12 + $0x78] sm:$0xff]  ;;  %v1009_v41 = vld [vmem:[%s3042_s12 + $0xe8] sm:$0xff]  ;;  %p2743_p3 = pnand %p2742_p2, %p2736_p13 }
  0x2f   : > { %2445 = vmatprep.subr.bf16.mxu1 %v2829_v0  ;;  %2096 = vmatprep.mubr.msk.f32.mxu0 %vm2830_vm0, %v2831_v1  ;;  %v2482_v40 = vpack.c.bf16 %v995_v38, %v994_v37  ;;  %v1021_v32 = vld [vmem:[%s3042_s12 + $0x148] sm:$0xff] }
  0x30   : > { %2107 = vmatprep.mubr.msk.f32.mxu1 %vm2830_vm0, %v2831_v1 }
  0x31   : > { %2441 = vmatpush3.bf16.msra.mxu0 %v2440_v44  ;;  %v987_v44 = vld [vmem:[%s3042_s12 + $0x38] sm:$0xff] }
  0x32   : > { %2447 = vmatpush3.bf16.msra.mxu1 %v2446_v46  ;;  %2448 = vmatprep.subr.bf16.mxu0 %v2829_v0  ;;  %v1002_v46 = vld [vmem:[%s3042_s12 + $0xb0] sm:$0xff]  ;;  %v2470_v48 = vpack.c.bf16 %v987_v44, %v986_v43  ;;  %v1011_v44 = vld [vmem:[%s3042_s12 + $0xf8] sm:$0xff] }
  0x33   : > { %2454 = vmatprep.subr.bf16.mxu1 %v2829_v0  ;;  %v2494_v51 = vpack.c.bf16 %v1003_v47, %v1002_v46  ;;  %v1010_v43 = vld [vmem:[%s3042_s12 + $0xf0] sm:$0xff] }
  0x34   : > { %2097 = vmatmul.mubr.msk.f32.vlgmr.msra.gmra.mrb[4].mxu0 %vm306_vm1, %v270_v52  ;;  %v2473_v52 = vpack.c.bf16 %v989_v50, %v988_v49 }
  0x35   : > { %2108 = vmatmul.mubr.msk.f32.vlgmr.msra.gmra.mrb[4].mxu1 %vm306_vm1, %v271_v53  ;;  %2450 = vmatpush3.bf16.msra.mxu0 %v2449_v54 }
  0x36   : > { %2451 = vmatprep.subr.bf16.mxu0 %v2829_v0  ;;  %2456 = vmatpush3.bf16.msra.mxu1 %v2455_v55 }
  0x37   : > { %2118 = vmatprep.mubr.msk.f32.mxu0 %vm2830_vm0, %v2831_v1  ;;  %2457 = vmatprep.subr.bf16.mxu1 %v2829_v0 }
  0x38   : > { %2129 = vmatprep.mubr.msk.f32.mxu1 %vm2830_vm0, %v2831_v1 }
  0x39   : > { %2453 = vmatpush3.bf16.msra.mxu0 %v2452_v60 }
  0x3a   : > { %2459 = vmatpush3.bf16.msra.mxu1 %v2458_v62  ;;  %2460 = vmatprep.subr.bf16.mxu0 %v2829_v0 }
  0x3b   : > { %2484 = vmatprep.subr.bf16.mxu1 %v2829_v0 }
  0x3c   : > { %2119 = vmatmul.mubr.msk.f32.vlgmr.msra.gmra.mrb[6].mxu0 %vm306_vm1, %v272_v2 }
  0x3d   : > { %2130 = vmatmul.mubr.msk.f32.vlgmr.msra.gmra.mrb[6].mxu1 %vm306_vm1, %v273_v3  ;;  %2164 = vmatprep.mubr.msk.f32.mxu0 %vm2830_vm0, %v2831_v1 }
  0x3e   : > { %2199 = vmatprep.mubr.msk.f32.mxu1 %vm2830_vm0, %v2831_v1  ;;  %2462 = vmatpush3.bf16.msra.mxu0 %v2461_v29 }
  0x3f   : > { %2463 = vmatprep.subr.bf16.mxu0 %v2829_v0  ;;  %2486 = vmatpush3.bf16.msra.mxu1 %v2485_v33  ;;  %v1006_v33 = vld [vmem:[%s3042_s12 + $0xd0] sm:$0xff] }
  0x40   : > { %2487 = vmatprep.subr.bf16.mxu1 %v2829_v0 }
  0x42   : > { %2465 = vmatpush3.bf16.msra.mxu0 %v2464_v35  ;;  %v1007_v35 = vld [vmem:[%s3042_s12 + $0xd8] sm:$0xff] }
  0x43   : > { %2466 = vmatprep.subr.bf16.mxu0 %v2829_v0  ;;  %2489 = vmatpush3.bf16.msra.mxu1 %v2488_v39  ;;  %v2500_v36 = vpack.c.bf16 %v1007_v35, %v1006_v33  ;;  %v1008_v39 = vld [vmem:[%s3042_s12 + $0xe0] sm:$0xff]  ;;  %v1034_v33 = vld [vmem:[%s3042_s12 + $0x1b0] sm:$0xff] }
  0x44   : > { %2490 = vmatprep.subr.bf16.mxu1 %v2829_v0 }
  0x46   : > { %2468 = vmatpush3.bf16.msra.mxu0 %v2467_v42  ;;  %v2503_v42 = vpack.c.bf16 %v1009_v41, %v1008_v39  ;;  %v1022_v39 = vld [vmem:[%s3042_s12 + $0x150] sm:$0xff]  ;;  %v1036_v41 = vld [vmem:[%s3042_s12 + $0x1c0] sm:$0xff] }
  0x47   : > { %2469 = vmatprep.subr.bf16.mxu0 %v2829_v0  ;;  %2492 = vmatpush3.bf16.msra.mxu1 %v2491_v45  ;;  %v2506_v45 = vpack.c.bf16 %v1011_v44, %v1010_v43 }
  0x48   : > { %2493 = vmatprep.subr.bf16.mxu1 %v2829_v0 }
  0x4a   : > { %2471 = vmatpush3.bf16.msra.mxu0 %v2470_v48 }
  0x4b   : > { %2472 = vmatprep.subr.bf16.mxu0 %v2829_v0  ;;  %2495 = vmatpush3.bf16.msra.mxu1 %v2494_v51 }
  0x4c   : > { %2496 = vmatprep.subr.bf16.mxu1 %v2829_v0 }
  0x4e   : > { %2474 = vmatpush3.bf16.msra.mxu0 %v2473_v52 }
  0x4f   : > { %2475 = vmatprep.subr.bf16.mxu0 %v2829_v0 }
  0xf7   : > { %v3010_v4 = vpop.f32.mrb[0].mxu0 }
  0xf8   : > { %v2054_v5 = vpop.f32.mrb[1].mxu0  ;;  %v892_v6 = vsel %vm891_vm2, %v3010_v4, -inf  ;;  %v3014_v7 = vpop.f32.mrb[0].mxu1 }
  0xf9   : > { %893 = vmax.xlane.f32.xlu0 %v892_v6  ;;  %v2065_v8 = vpop.f32.mrb[1].mxu1  ;;  %v895_v9 = vsel %vm891_vm2, %v3014_v7, -inf }
  0xfd   : > { %896 = vmax.xlane.f32.xlu0 %v895_v9 }
  0xff   : > { %v3018_v10 = vpop.f32.mrb[2].mxu0 }
 0x100   : > { %v898_v11 = vsel %vm891_vm2, %v3018_v10, -inf  ;;  %v3022_v12 = vpop.f32.mrb[2].mxu1  ;;  %v2076_v13 = vpop.f32.mrb[3].mxu0 }
 0x101   : > { %899 = vmax.xlane.f32.xlu1 %v898_v11  ;;  %v2087_v14 = vpop.f32.mrb[3].mxu1  ;;  %v901_v15 = vsel %vm891_vm2, %v3022_v12, -inf }
 0x105   : > { %902 = vmax.xlane.f32.xlu1 %v901_v15 }
 0x107   : > { %v3026_v16 = vpop.f32.mrb[4].mxu0 }
 0x108   : > { %v3028_v17 = vpop.f32.mrb[4].mxu1  ;;  %v904_v18 = vsel %vm891_vm2, %v3026_v16, -inf  ;;  %v2098_v19 = vpop.f32.mrb[5].mxu0 }
 0x109   : > { %v907_v20 = vsel %vm891_vm2, %v3028_v17, -inf  ;;  %905 = vmax.xlane.f32.xlu0 %v904_v18  ;;  %v2109_v21 = vpop.f32.mrb[5].mxu1  ;;  %v990_v19 = vld [vmem:[%s3042_s12 + $0x50] sm:$0xff] }
 0x10a   : > { %908 = vmax.xlane.f32.xlu1 %v907_v20  ;;  %v991_v20 = vld [vmem:[%s3042_s12 + $0x58] sm:$0xff]  ;;  %v1004_v21 = vld [vmem:[%s3042_s12 + $0xc0] sm:$0xff] }
 0x10b   : > { %v2497_v29 = vpack.c.bf16 %v1005_v26, %v1004_v21  ;;  %v1033_v21 = vld [vmem:[%s3042_s12 + $0x1a8] sm:$0xff] }
 0x10d   : > { %2498 = vmatpush3.bf16.msra.mxu1 %v2497_v29 }
 0x10e   : > { %2499 = vmatprep.subr.bf16.mxu1 %v2829_v0 }
 0x10f   : > { %v3034_v22 = vpop.f32.mrb[6].mxu0 }
 0x110   : > { %v2120_v23 = vpop.f32.mrb[7].mxu0  ;;  %v3036_v24 = vpop.f32.mrb[6].mxu1  ;;  %v910_v9 = vsel %vm891_vm2, %v3034_v22, -inf }
 0x111   : > { %v2131_v25 = vpop.f32.mrb[7].mxu1  ;;  %v913_v14 = vsel %vm891_vm2, %v3036_v24, -inf  ;;  %2501 = vmatpush3.bf16.msra.mxu1 %v2500_v36 }
 0x112   : > { %v2476_v25 = vpack.c.bf16 %v991_v20, %v990_v19  ;;  %2502 = vmatprep.subr.bf16.mxu1 %v2829_v0  ;;  %v1019_v19 = vld [vmem:[%s3042_s12 + $0x138] sm:$0xff]  ;;  %v1032_v20 = vld [vmem:[%s3042_s12 + $0x1a0] sm:$0xff] }
 0x113   : > { %v2539_v29 = vpack.c.bf16 %v1033_v21, %v1032_v20  ;;  %v1052_v20 = vld [vmem:[%s3042_s12 + $0x240] sm:$0xff]  ;;  %v1053_v21 = vld [vmem:[%s3042_s12 + $0x248] sm:$0xff] }
 0x114   : > { %2477 = vmatpush3.bf16.msra.mxu0 %v2476_v25 }
 0x115   : > { %2478 = vmatprep.subr.bf16.mxu0 %v2829_v0  ;;  %2504 = vmatpush3.bf16.msra.mxu1 %v2503_v42  ;;  %v1037_v42 = vld [vmem:[%s3042_s12 + $0x1c8] sm:$0xff] }
 0x116   : > { %2505 = vmatprep.subr.bf16.mxu1 %v2829_v0 }
 0x118   : > { %2480 = vmatpush3.bf16.msra.mxu0 %v2479_v34  ;;  %v1035_v34 = vld [vmem:[%s3042_s12 + $0x1b8] sm:$0xff] }
 0x119   : > { %2481 = vmatprep.subr.bf16.mxu0 %v2829_v0  ;;  %2507 = vmatpush3.bf16.msra.mxu1 %v2506_v45  ;;  %v2542_v38 = vpack.c.bf16 %v1035_v34, %v1034_v33  ;;  %v1069_v33 = vld [vmem:[%s3042_s12 + $0x2c8] sm:$0xff] }
 0x11a   : > { %2532 = vmatprep.subr.bf16.mxu1 %v2829_v0 }
 0x11c   : > { %2483 = vmatpush3.bf16.msra.mxu0 %v2482_v40 }
 0x11d   : > { %2508 = vmatprep.subr.bf16.mxu0 %v2829_v0 }
 0x186   : > { %v894_v53 = vpop.xlane.xlu0 %893 }
 0x187   : > { %v916_v54 = vsub.f32 %v3010_v4, %v894_v53  ;;  %v1012_v53 = vld [vmem:[%s3042_s12 + $0x100] sm:$0xff] }
 0x189   : > { %v924_v55 = vmul.f32 1.442695, %v916_v54  ;;  %v1013_v54 = vld [vmem:[%s3042_s12 + $0x108] sm:$0xff] }
 0x18a   : > { %v897_v56 = vpop.xlane.xlu0 %896 }
 0x18b   : > { %2701 = vpow2.f32 %v924_v55  ;;  %v917_v57 = vsub.f32 %v3014_v7, %v897_v56 }
 0x18d   : > { %v926_v58 = vmul.f32 1.442695, %v917_v57 }
 0x18e   : > { %v900_v59 = vpop.xlane.xlu1 %899 }
 0x18f   : > { %2703 = vpow2.f32 %v926_v58  ;;  %v918_v60 = vsub.f32 %v3018_v10, %v900_v59  ;;  %v1014_v58 = vld [vmem:[%s3042_s12 + $0x110] sm:$0xff] }
 0x191   : > { %v928_v61 = vmul.f32 1.442695, %v918_v60 }
 0x192   : > { %v903_v62 = vpop.xlane.xlu1 %902 }
 0x193   : > { %2705 = vpow2.f32 %v928_v61  ;;  %v919_v63 = vsub.f32 %v3022_v12, %v903_v62  ;;  %v1015_v61 = vld [vmem:[%s3042_s12 + $0x118] sm:$0xff]  ;;  %v1028_v62 = vld [vmem:[%s3042_s12 + $0x180] sm:$0xff] }
 0x195   : > { %v3075_v2 = vpop.eup %2701  ;;  %v930_v3 = vmul.f32 1.442695, %v919_v63  ;;  %v1029_v63 = vld [vmem:[%s3042_s12 + $0x188] sm:$0xff] }
 0x196   : > { %v906_v5 = vpop.xlane.xlu0 %905  ;;  %v940_v4 = vsel %vm891_vm2, %v3075_v2, 0.0 }
 0x197   : > { %2707 = vpow2.f32 %v930_v3  ;;  %v909_v6 = vpop.xlane.xlu1 %908  ;;  %v920_v7 = vsub.f32 %v3026_v16, %v906_v5  ;;  %941 = vadd.xlane.f32.xlu0 %v940_v4  ;;  %v2512_v3 = vpack.c.bf16 %v1015_v61, %v1014_v58  ;;  %v2533_v5 = vpack.c.bf16 %v1029_v63, %v1028_v62  ;;  %v1044_v58 = vld [vmem:[%s3042_s12 + $0x200] sm:$0xff]  ;;  %v1046_v62 = vld [vmem:[%s3042_s12 + $0x210] sm:$0xff]  ;;  %v1047_v63 = vld [vmem:[%s3042_s12 + $0x218] sm:$0xff] }
 0x198   : > { %v921_v8 = vsub.f32 %v3028_v17, %v909_v6 }
 0x199   : > { %v3083_v10 = vpop.eup %2703  ;;  %v932_v11 = vmul.f32 1.442695, %v920_v7  ;;  %v1017_v7 = vld [vmem:[%s3042_s12 + $0x128] sm:$0xff] }
 0x19a   : > { %v934_v12 = vmul.f32 1.442695, %v921_v8  ;;  %v943_v13 = vsel %vm891_vm2, %v3083_v10, 0.0  ;;  %v1030_v8 = vld [vmem:[%s3042_s12 + $0x190] sm:$0xff] }
 0x19b   : > { %2709 = vpow2.f32 %v932_v11  ;;  %944 = vadd.xlane.f32.xlu1 %v943_v13  ;;  %911 = vmax.xlane.f32.xlu0 %v910_v9  ;;  %v1031_v9 = vld [vmem:[%s3042_s12 + $0x198] sm:$0xff] }
 0x19c   : > { %2711 = vpow2.f32 %v934_v12 }
 0x19d   : > { %v3089_v15 = vpop.eup %2705 }
 0x19e   : > { %v946_v16 = vsel %vm891_vm2, %v3089_v15, 0.0 }
 0x19f   : > { %914 = vmax.xlane.f32.xlu1 %v913_v14  ;;  %947 = vadd.xlane.f32.xlu0 %v946_v16  ;;  %v2536_v14 = vpack.c.bf16 %v1031_v9, %v1030_v8  ;;  %v1018_v16 = vld [vmem:[%s3042_s12 + $0x130] sm:$0xff]  ;;  %v1063_v8 = vld [vmem:[%s3042_s12 + $0x298] sm:$0xff] }
 0x1a1   : > { %v3093_v17 = vpop.eup %2707 }
 0x1a2   : > { %v949_v18 = vsel %vm891_vm2, %v3093_v17, 0.0 }
 0x1a3   : > { %950 = vadd.xlane.f32.xlu1 %v949_v18 }
 0x1a5   : > { %v3100_v23 = vpop.eup %2709 }
 0x1a6   : > { %v3103_v27 = vpop.eup %2711  ;;  %v952_v28 = vsel %vm891_vm2, %v3100_v23, 0.0 }
 0x1a7   : > { %v955_v30 = vsel %vm891_vm2, %v3103_v27, 0.0  ;;  %953 = vadd.xlane.f32.xlu0 %v952_v28  ;;  %v2518_v28 = vpack.c.bf16 %v1019_v19, %v1018_v16  ;;  %v1064_v16 = vld [vmem:[%s3042_s12 + $0x2a0] sm:$0xff] }
 0x1a8   : > { %956 = vadd.xlane.f32.xlu1 %v955_v30  ;;  %v1020_v30 = vld [vmem:[%s3042_s12 + $0x140] sm:$0xff] }
 0x1a9   : > { %v2521_v37 = vpack.c.bf16 %v1021_v32, %v1020_v30  ;;  %v1068_v32 = vld [vmem:[%s3042_s12 + $0x2c0] sm:$0xff] }
 0x224   : > { %v942_v46 = vpop.xlane.xlu0 %941 }
 0x225   : > { %2713 = vrcp.f32 %v942_v46  ;;  %v2545_v46 = vpack.c.bf16 %v1037_v42, %v1036_v41  ;;  %v1058_v41 = vld [vmem:[%s3042_s12 + $0x270] sm:$0xff]  ;;  %v1059_v42 = vld [vmem:[%s3042_s12 + $0x278] sm:$0xff] }
 0x228   : > { %v945_v47 = vpop.xlane.xlu1 %944  ;;  %v912_v48 = vpop.xlane.xlu0 %911 }
 0x229   : > { %2715 = vrcp.f32 %v945_v47  ;;  %v922_v49 = vsub.f32 %v3034_v22, %v912_v48  ;;  %v2509_v22 = vpack.c.bf16 %v1013_v54, %v1012_v53  ;;  %v1024_v47 = vld [vmem:[%s3042_s12 + $0x160] sm:$0xff]  ;;  %v1039_v48 = vld [vmem:[%s3042_s12 + $0x1d8] sm:$0xff]  ;;  %v1041_v54 = vld [vmem:[%s3042_s12 + $0x1e8] sm:$0xff] }
 0x22a   : > { %v1040_v53 = vld [vmem:[%s3042_s12 + $0x1e0] sm:$0xff] }
 0x22b   : > { %v936_v50 = vmul.f32 1.442695, %v922_v49 }
 0x22c   : > { %v915_v51 = vpop.xlane.xlu1 %914  ;;  %v948_v52 = vpop.xlane.xlu0 %947 }
 0x22d   : > { %2717 = vpow2.f32 %v936_v50  ;;  %v923_v55 = vsub.f32 %v3036_v24, %v915_v51  ;;  %v1026_v51 = vld [vmem:[%s3042_s12 + $0x170] sm:$0xff] }
 0x22e   : > { %2719 = vrcp.f32 %v948_v52  ;;  %v1027_v52 = vld [vmem:[%s3042_s12 + $0x178] sm:$0xff] }
 0x22f   : > { %v2714_v56 = vpop.eup %2713  ;;  %v938_v57 = vmul.f32 1.442695, %v923_v55  ;;  %v2530_v55 = vpack.c.bf16 %v1027_v52, %v1026_v51 }
 0x230   : > { %v951_v59 = vpop.xlane.xlu1 %950  ;;  %v972_v60 = vmul.f32 %v2714_v56, %v3075_v2  ;;  %v1016_v2 = vld [vmem:[%s3042_s12 + $0x120] sm:$0xff]  ;;  %v2551_v56 = vpack.c.bf16 %v1041_v54, %v1040_v53  ;;  %v1078_v53 = vld [vmem:[%s3042_s12 + $0x310] sm:$0xff]  ;;  %v1079_v54 = vld [vmem:[%s3042_s12 + $0x318] sm:$0xff] }
 0x231   : > { %2721 = vpow2.f32 %v938_v57  ;;  %v2515_v13 = vpack.c.bf16 %v1017_v7, %v1016_v2  ;;  %v1042_v57 = vld [vmem:[%s3042_s12 + $0x1f0] sm:$0xff] }
 0x232   : > { %2723 = vrcp.f32 %v951_v59  ;;  %2165 = vmatmul.mubr.f32.vlgmr.msra.gmra.mrb[8].mxu0 %v972_v60  ;;  %1668 = vst [vmem:[%s3141_s20] sm:$0x1] %v972_v60  ;;  %v1045_v59 = vld [vmem:[%s3042_s12 + $0x208] sm:$0xff]  ;;  %v1062_v7 = vld [vmem:[%s3042_s12 + $0x290] sm:$0xff] }
 0x233   : > { %v2716_v24 = vpop.eup %2715  ;;  %2510 = vmatpush3.bf16.msra.mxu0 %v2509_v22  ;;  %2234 = vmatprep.mubr.msk.f32.mxu0 %vm2830_vm0, %v2831_v1  ;;  %v1043_v22 = vld [vmem:[%s3042_s12 + $0x1f8] sm:$0xff]  ;;  %v2557_v61 = vpack.c.bf16 %v1045_v59, %v1044_v58  ;;  %v1080_v58 = vld [vmem:[%s3042_s12 + $0x320] sm:$0xff]  ;;  %v1081_v59 = vld [vmem:[%s3042_s12 + $0x328] sm:$0xff] }
 0x234   : > { %v954_v4 = vpop.xlane.xlu0 %953  ;;  %2511 = vmatprep.subr.bf16.mxu0 %v2829_v0  ;;  %v973_v6 = vmul.f32 %v2716_v24, %v3083_v10  ;;  %v2554_v60 = vpack.c.bf16 %v1043_v22, %v1042_v57  ;;  %v1060_v24 = vld [vmem:[%s3042_s12 + $0x280] sm:$0xff]  ;;  %v2608_v57 = vpack.c.bf16 %v1079_v54, %v1078_v53 }
 0x235   : > { %v957_v11 = vpop.xlane.xlu1 %956  ;;  %2725 = vrcp.f32 %v954_v4  ;;  %v1048_v4 = vld [vmem:[%s3042_s12 + $0x220] sm:$0xff] }
 0x236   : > { %2727 = vrcp.f32 %v957_v11  ;;  %2200 = vmatmul.mubr.f32.vlgmr.msra.gmra.mrb[8].mxu1 %v973_v6  ;;  %1669 = vst [vmem:[%s3141_s20 + $0x1] sm:$0x1] %v973_v6  ;;  %v1049_v6 = vld [vmem:[%s3042_s12 + $0x228] sm:$0xff]  ;;  %v2584_v11 = vpack.c.bf16 %v1063_v8, %v1062_v7  ;;  %v1098_v7 = vld [vmem:[%s3042_s12 + $0x3b0] sm:$0xff]  ;;  %v1099_v8 = vld [vmem:[%s3042_s12 + $0x3b8] sm:$0xff] }
 0x237   : > { %v3153_v12 = vpop.eup %2717  ;;  %2513 = vmatpush3.bf16.msra.mxu0 %v2512_v3  ;;  %2534 = vmatpush3.bf16.msra.mxu1 %v2533_v5  ;;  %v1061_v3 = vld [vmem:[%s3042_s12 + $0x288] sm:$0xff]  ;;  %v2560_v5 = vpack.c.bf16 %v1047_v63, %v1046_v62  ;;  %v2563_v9 = vpack.c.bf16 %v1049_v6, %v1048_v4  ;;  %v1082_v63 = vld [vmem:[%s3042_s12 + $0x330] sm:$0xff]  ;;  %v1084_v4 = vld [vmem:[%s3042_s12 + $0x340] sm:$0xff] }
 0x238   : > { %v2720_v10 = vpop.eup %2719  ;;  %2514 = vmatprep.subr.bf16.mxu0 %v2829_v0  ;;  %2535 = vmatprep.subr.bf16.mxu1 %v2829_v0  ;;  %v958_v18 = vsel %vm891_vm2, %v3153_v12, 0.0  ;;  %v2581_v2 = vpack.c.bf16 %v1061_v3, %v1060_v24  ;;  %v1083_v24 = vld [vmem:[%s3042_s12 + $0x338] sm:$0xff]  ;;  %v1096_v3 = vld [vmem:[%s3042_s12 + $0x3a0] sm:$0xff]  ;;  %v1085_v6 = vld [vmem:[%s3042_s12 + $0x348] sm:$0xff] }
 0x239   : > { %959 = vadd.xlane.f32.xlu0 %v958_v18  ;;  %v3164_v25 = vmul.f32 %v2720_v10, %v3089_v15  ;;  %2269 = vmatprep.mubr.msk.f32.mxu1 %vm2830_vm0, %v2831_v1  ;;  %v1065_v10 = vld [vmem:[%s3042_s12 + $0x2a8] sm:$0xff] }
 0x23a   : > { %v2587_v19 = vpack.c.bf16 %v1065_v10, %v1064_v16  ;;  %v1101_v16 = vld [vmem:[%s3042_s12 + $0x3c8] sm:$0xff] }
 0x23b   : > { %v3168_v26 = vpop.eup %2721  ;;  %2516 = vmatpush3.bf16.msra.mxu0 %v2515_v13  ;;  %2537 = vmatpush3.bf16.msra.mxu1 %v2536_v14  ;;  %1670 = vst [vmem:[%s3141_s20 + $0x2] sm:$0x1] %v3164_v25  ;;  %v1050_v13 = vld [vmem:[%s3042_s12 + $0x230] sm:$0xff]  ;;  %v1051_v14 = vld [vmem:[%s3042_s12 + $0x238] sm:$0xff] }
 0x23c   : > { %v2724_v31 = vpop.eup %2723  ;;  %2538 = vmatprep.subr.bf16.mxu1 %v2829_v0  ;;  %v961_v15 = vsel %vm891_vm2, %v3168_v26, 0.0  ;;  %2517 = vmatprep.subr.bf16.mxu0 %v2829_v0  ;;  %v2566_v18 = vpack.c.bf16 %v1051_v14, %v1050_v13  ;;  %v1087_v13 = vld [vmem:[%s3042_s12 + $0x358] sm:$0xff]  ;;  %v1100_v14 = vld [vmem:[%s3042_s12 + $0x3c0] sm:$0xff] }
 0x23d   : > { %962 = vadd.xlane.f32.xlu1 %v961_v15  ;;  %v3181_v35 = vmul.f32 %v2724_v31, %v3093_v17  ;;  %v1023_v17 = vld [vmem:[%s3042_s12 + $0x158] sm:$0xff]  ;;  %v1054_v31 = vld [vmem:[%s3042_s12 + $0x250] sm:$0xff] }
 0x23e   : > { %v2524_v45 = vpack.c.bf16 %v1023_v17, %v1022_v39  ;;  %v1055_v15 = vld [vmem:[%s3042_s12 + $0x258] sm:$0xff] }
 0x23f   : > { %v2726_v36 = vpop.eup %2725  ;;  %2519 = vmatpush3.bf16.msra.mxu0 %v2518_v28  ;;  %2540 = vmatpush3.bf16.msra.mxu1 %v2539_v29  ;;  %1671 = vst [vmem:[%s3141_s20 + $0x3] sm:$0x1] %v3181_v35  ;;  %v1067_v28 = vld [vmem:[%s3042_s12 + $0x2b8] sm:$0xff]  ;;  %v2569_v29 = vpack.c.bf16 %v1053_v21, %v1052_v20  ;;  %v2572_v34 = vpack.c.bf16 %v1055_v15, %v1054_v31  ;;  %v1089_v20 = vld [vmem:[%s3042_s12 + $0x368] sm:$0xff]  ;;  %v1102_v21 = vld [vmem:[%s3042_s12 + $0x3d0] sm:$0xff] }
 0x240   : > { %v2728_v40 = vpop.eup %2727  ;;  %2520 = vmatprep.subr.bf16.mxu0 %v2829_v0  ;;  %2541 = vmatprep.subr.bf16.mxu1 %v2829_v0  ;;  %v3192_v43 = vmul.f32 %v2726_v36, %v3100_v23  ;;  %v1025_v23 = vld [vmem:[%s3042_s12 + $0x168] sm:$0xff]  ;;  %v1056_v36 = vld [vmem:[%s3042_s12 + $0x260] sm:$0xff]  ;;  %v1071_v39 = vld [vmem:[%s3042_s12 + $0x2d8] sm:$0xff] }
 0x241   : > { %v3195_v44 = vmul.f32 %v2728_v40, %v3103_v27  ;;  %v1038_v27 = vld [vmem:[%s3042_s12 + $0x1d0] sm:$0xff]  ;;  %v2527_v49 = vpack.c.bf16 %v1025_v23, %v1024_v47  ;;  %v2578_v47 = vpack.c.bf16 %v1059_v42, %v1058_v41  ;;  %v1091_v31 = vld [vmem:[%s3042_s12 + $0x378] sm:$0xff]  ;;  %v1104_v15 = vld [vmem:[%s3042_s12 + $0x3e0] sm:$0xff] }
 0x242   : > { %1672 = vst [vmem:[%s3141_s20 + $0x4] sm:$0x1] %v3192_v43  ;;  %v2548_v50 = vpack.c.bf16 %v1039_v48, %v1038_v27  ;;  %v1074_v27 = vld [vmem:[%s3042_s12 + $0x2f0] sm:$0xff]  ;;  %v1075_v48 = vld [vmem:[%s3042_s12 + $0x2f8] sm:$0xff] }
 0x243   : > { %2522 = vmatpush3.bf16.msra.mxu0 %v2521_v37  ;;  %2543 = vmatpush3.bf16.msra.mxu1 %v2542_v38  ;;  %1673 = vst [vmem:[%s3141_s20 + $0x5] sm:$0x1] %v3195_v44  ;;  %v1057_v37 = vld [vmem:[%s3042_s12 + $0x268] sm:$0xff]  ;;  %v1070_v38 = vld [vmem:[%s3042_s12 + $0x2d0] sm:$0xff]  ;;  %v2602_v51 = vpack.c.bf16 %v1075_v48, %v1074_v27 }
 0x244   : > { %2523 = vmatprep.subr.bf16.mxu0 %v2829_v0  ;;  %2544 = vmatprep.subr.bf16.mxu1 %v2829_v0  ;;  %v2575_v40 = vpack.c.bf16 %v1057_v37, %v1056_v36  ;;  %v2596_v17 = vpack.c.bf16 %v1071_v39, %v1070_v38  ;;  %v1107_v36 = vld [vmem:[%s3042_s12 + $0x3f8] sm:$0xff] }
 0x247   : > { %2525 = vmatpush3.bf16.msra.mxu0 %v2524_v45  ;;  %2546 = vmatpush3.bf16.msra.mxu1 %v2545_v46  ;;  %v1072_v45 = vld [vmem:[%s3042_s12 + $0x2e0] sm:$0xff]  ;;  %v1073_v46 = vld [vmem:[%s3042_s12 + $0x2e8] sm:$0xff] }
 0x248   : > { %2526 = vmatprep.subr.bf16.mxu0 %v2829_v0  ;;  %2547 = vmatprep.subr.bf16.mxu1 %v2829_v0  ;;  %v2599_v23 = vpack.c.bf16 %v1073_v46, %v1072_v45 }
 0x24b   : > { %2528 = vmatpush3.bf16.msra.mxu0 %v2527_v49  ;;  %2549 = vmatpush3.bf16.msra.mxu1 %v2548_v50  ;;  %v1076_v49 = vld [vmem:[%s3042_s12 + $0x300] sm:$0xff]  ;;  %v1077_v50 = vld [vmem:[%s3042_s12 + $0x308] sm:$0xff] }
 0x24c   : > { %2529 = vmatprep.subr.bf16.mxu0 %v2829_v0  ;;  %2550 = vmatprep.subr.bf16.mxu1 %v2829_v0  ;;  %v2605_v52 = vpack.c.bf16 %v1077_v50, %v1076_v49 }
 0x24f   : > { %2531 = vmatpush3.bf16.msra.mxu0 %v2530_v55  ;;  %2552 = vmatpush3.bf16.msra.mxu1 %v2551_v56  ;;  %v1092_v55 = vld [vmem:[%s3042_s12 + $0x380] sm:$0xff]  ;;  %v1093_v56 = vld [vmem:[%s3042_s12 + $0x388] sm:$0xff] }
 0x250   : > { %2553 = vmatprep.subr.bf16.mxu1 %v2829_v0  ;;  %2556 = vmatprep.subr.bf16.mxu0 %v2829_v0  ;;  %v2629_v22 = vpack.c.bf16 %v1093_v56, %v1092_v55 }
 0x252   : > { %2235 = vmatmul.mubr.f32.vlgmr.msra.gmra.mrb[10].mxu0 %v3164_v25  ;;  %v1066_v25 = vld [vmem:[%s3042_s12 + $0x2b0] sm:$0xff] }
 0x253   : > { %2555 = vmatpush3.bf16.msra.mxu1 %v2554_v60  ;;  %2558 = vmatpush3.bf16.msra.mxu0 %v2557_v61  ;;  %v2590_v30 = vpack.c.bf16 %v1067_v28, %v1066_v25  ;;  %v1094_v60 = vld [vmem:[%s3042_s12 + $0x390] sm:$0xff]  ;;  %v1095_v61 = vld [vmem:[%s3042_s12 + $0x398] sm:$0xff] }
 0x254   : > { %2559 = vmatprep.subr.bf16.mxu0 %v2829_v0  ;;  %2580 = vmatprep.subr.bf16.mxu1 %v2829_v0  ;;  %v2632_v62 = vpack.c.bf16 %v1095_v61, %v1094_v60  ;;  %v1103_v25 = vld [vmem:[%s3042_s12 + $0x3d8] sm:$0xff] }
 0x255   : > { %2304 = vmatprep.mubr.msk.f32.mxu0 %vm2830_vm0, %v2831_v1 }
 0x256   : > { %2270 = vmatmul.mubr.f32.vlgmr.msra.gmra.mrb[10].mxu1 %v3181_v35  ;;  %v2593_v35 = vpack.c.bf16 %v1069_v33, %v1068_v32  ;;  %v1105_v32 = vld [vmem:[%s3042_s12 + $0x3e8] sm:$0xff] }
 0x257   : > { %2561 = vmatpush3.bf16.msra.mxu0 %v2560_v5  ;;  %2582 = vmatpush3.bf16.msra.mxu1 %v2581_v2  ;;  %v1097_v5 = vld [vmem:[%s3042_s12 + $0x3a8] sm:$0xff] }
 0x258   : > { %2562 = vmatprep.subr.bf16.mxu0 %v2829_v0  ;;  %2583 = vmatprep.subr.bf16.mxu1 %v2829_v0  ;;  %v2635_v2 = vpack.c.bf16 %v1097_v5, %v1096_v3 }
 0x259   : > { %2339 = vmatprep.mubr.msk.f32.mxu1 %vm2830_vm0, %v2831_v1 }
 0x25b   : > { %2564 = vmatpush3.bf16.msra.mxu0 %v2563_v9  ;;  %2585 = vmatpush3.bf16.msra.mxu1 %v2584_v11  ;;  %v2638_v9 = vpack.c.bf16 %v1099_v8, %v1098_v7  ;;  %v1086_v11 = vld [vmem:[%s3042_s12 + $0x350] sm:$0xff] }
 0x25c   : > { %2565 = vmatprep.subr.bf16.mxu0 %v2829_v0  ;;  %2586 = vmatprep.subr.bf16.mxu1 %v2829_v0  ;;  %v2620_v10 = vpack.c.bf16 %v1087_v13, %v1086_v11 }
 0x25f   : > { %2567 = vmatpush3.bf16.msra.mxu0 %v2566_v18  ;;  %2588 = vmatpush3.bf16.msra.mxu1 %v2587_v19  ;;  %v2641_v18 = vpack.c.bf16 %v1101_v16, %v1100_v14  ;;  %v1088_v19 = vld [vmem:[%s3042_s12 + $0x360] sm:$0xff] }
 0x260   : > { %2568 = vmatprep.subr.bf16.mxu0 %v2829_v0  ;;  %2589 = vmatprep.subr.bf16.mxu1 %v2829_v0  ;;  %v2623_v28 = vpack.c.bf16 %v1089_v20, %v1088_v19 }
 0x263   : > { %2570 = vmatpush3.bf16.msra.mxu0 %v2569_v29  ;;  %2591 = vmatpush3.bf16.msra.mxu1 %v2590_v30  ;;  %v2644_v29 = vpack.c.bf16 %v1103_v25, %v1102_v21  ;;  %v1090_v30 = vld [vmem:[%s3042_s12 + $0x370] sm:$0xff] }
 0x264   : > { %2571 = vmatprep.subr.bf16.mxu0 %v2829_v0  ;;  %2592 = vmatprep.subr.bf16.mxu1 %v2829_v0  ;;  %v2626_v33 = vpack.c.bf16 %v1091_v31, %v1090_v30 }
 0x267   : > { %2573 = vmatpush3.bf16.msra.mxu0 %v2572_v34  ;;  %2594 = vmatpush3.bf16.msra.mxu1 %v2593_v35  ;;  %v2647_v34 = vpack.c.bf16 %v1105_v32, %v1104_v15  ;;  %v1106_v35 = vld [vmem:[%s3042_s12 + $0x3f0] sm:$0xff] }
 0x268   : > { %2574 = vmatprep.subr.bf16.mxu0 %v2829_v0  ;;  %2595 = vmatprep.subr.bf16.mxu1 %v2829_v0  ;;  %v2650_v37 = vpack.c.bf16 %v1107_v36, %v1106_v35 }
 0x26b   : > { %2576 = vmatpush3.bf16.msra.mxu0 %v2575_v40  ;;  %2597 = vmatpush3.bf16.msra.mxu1 %v2596_v17 }
 0x26c   : > { %2577 = vmatprep.subr.bf16.mxu0 %v2829_v0  ;;  %2598 = vmatprep.subr.bf16.mxu1 %v2829_v0 }
 0x26f   : > { %2579 = vmatpush3.bf16.msra.mxu0 %v2578_v47  ;;  %2600 = vmatpush3.bf16.msra.mxu1 %v2599_v23 }
 0x270   : > { %2601 = vmatprep.subr.bf16.mxu1 %v2829_v0  ;;  %2604 = vmatprep.subr.bf16.mxu0 %v2829_v0 }
 0x272   : > { %2305 = vmatmul.mubr.f32.vlgmr.msra.gmra.mrb[12].mxu0 %v3192_v43  ;;  %v2611_v43 = vpack.c.bf16 %v1081_v59, %v1080_v58 }
 0x273   : > { %2603 = vmatpush3.bf16.msra.mxu1 %v2602_v51  ;;  %2606 = vmatpush3.bf16.msra.mxu0 %v2605_v52 }
 0x274   : > { %2607 = vmatprep.subr.bf16.mxu0 %v2829_v0  ;;  %2628 = vmatprep.subr.bf16.mxu1 %v2829_v0 }
 0x275   : > { %2374 = vmatprep.mubr.msk.f32.mxu0 %vm2830_vm0, %v2831_v1 }
 0x276   : > { %2340 = vmatmul.mubr.f32.vlgmr.msra.gmra.mrb[12].mxu1 %v3195_v44  ;;  %v2614_v44 = vpack.c.bf16 %v1083_v24, %v1082_v63 }
 0x277   : > { %2609 = vmatpush3.bf16.msra.mxu0 %v2608_v57  ;;  %2630 = vmatpush3.bf16.msra.mxu1 %v2629_v22 }
 0x278   : > { %2610 = vmatprep.subr.bf16.mxu0 %v2829_v0  ;;  %2631 = vmatprep.subr.bf16.mxu1 %v2829_v0 }
 0x279   : > { %2409 = vmatprep.mubr.msk.f32.mxu1 %vm2830_vm0, %v2831_v1  ;;  %v2617_v1 = vpack.c.bf16 %v1085_v6, %v1084_v4 }
 0x27b   : > { %2612 = vmatpush3.bf16.msra.mxu0 %v2611_v43  ;;  %2633 = vmatpush3.bf16.msra.mxu1 %v2632_v62 }
 0x27c   : > { %2613 = vmatprep.subr.bf16.mxu0 %v2829_v0  ;;  %2634 = vmatprep.subr.bf16.mxu1 %v2829_v0 }
 0x27f   : > { %2615 = vmatpush3.bf16.msra.mxu0 %v2614_v44  ;;  %2636 = vmatpush3.bf16.msra.mxu1 %v2635_v2 }
 0x280   : > { %2616 = vmatprep.subr.bf16.mxu0 %v2829_v0  ;;  %2637 = vmatprep.subr.bf16.mxu1 %v2829_v0 }
 0x283   : > { %2618 = vmatpush3.bf16.msra.mxu0 %v2617_v1  ;;  %2639 = vmatpush3.bf16.msra.mxu1 %v2638_v9 }
 0x284   : > { %2619 = vmatprep.subr.bf16.mxu0 %v2829_v0  ;;  %2640 = vmatprep.subr.bf16.mxu1 %v2829_v0 }
 0x287   : > { %2621 = vmatpush3.bf16.msra.mxu0 %v2620_v10  ;;  %2642 = vmatpush3.bf16.msra.mxu1 %v2641_v18 }
 0x288   : > { %2622 = vmatprep.subr.bf16.mxu0 %v2829_v0  ;;  %2643 = vmatprep.subr.bf16.mxu1 %v2829_v0 }
 0x28b   : > { %2624 = vmatpush3.bf16.msra.mxu0 %v2623_v28  ;;  %2645 = vmatpush3.bf16.msra.mxu1 %v2644_v29 }
 0x28c   : > { %2625 = vmatprep.subr.bf16.mxu0 %v2829_v0  ;;  %2646 = vmatprep.subr.bf16.mxu1 %v2829_v0 }
 0x28f   : > { %2627 = vmatpush3.bf16.msra.mxu0 %v2626_v33  ;;  %2648 = vmatpush3.bf16.msra.mxu1 %v2647_v34 }
 0x290   : > { %2649 = vmatprep.subr.bf16.mxu1 %v2829_v0 }
 0x293   : > { %2651 = vmatpush3.bf16.msra.mxu1 %v2650_v37 }
 0x2c6   : > { %v960_v38 = vpop.xlane.xlu0 %959 }
 0x2c7   : > { %2729 = vrcp.f32 %v960_v38 }
 0x2ca   : > { %v963_v39 = vpop.xlane.xlu1 %962 }
 0x2cb   : > { %2731 = vrcp.f32 %v963_v39 }
 0x2d1   : > { %v2730_v40 = vpop.eup %2729 }
 0x2d2   : > { %v978_v17 = vmul.f32 %v2730_v40, %v3153_v12 }
 0x2d4   : > { %2375 = vmatmul.mubr.f32.vlgmr.msra.gmra.mrb[14].mxu0 %v978_v17  ;;  %1674 = vst [vmem:[%s3141_s20 + $0x6] sm:$0x1] %v978_v17 }
 0x2d5   : > { %v2732_v41 = vpop.eup %2731 }
 0x2d6   : > { %v979_v42 = vmul.f32 %v2732_v41, %v3168_v26 }
 0x2d8   : > { %2410 = vmatmul.mubr.f32.vlgmr.msra.gmra.mrb[14].mxu1 %v979_v42  ;;  %1675 = vst [vmem:[%s3141_s20 + $0x7] sm:$0x1] %v979_v42 }
 0x305   : > { %v1174_v0 = vpop.f32.mrb[8].mxu0 }
 0x306   : > { %1677 = vst.msk [vmem:[%s3332_s22] sm:$0x1] %vm1676_vm3, %v1174_v0  ;;  %v2166_v12 = vpop.f32.mrb[9].mxu0 }
 0x309   : > { %v1244_v45 = vpop.f32.mrb[8].mxu1 }
 0x30a   : > { %1678 = vst.msk [vmem:[%s3332_s22 + $0x1] sm:$0x1] %vm1676_vm3, %v1244_v45  ;;  %v2201_v26 = vpop.f32.mrb[9].mxu1 }
 0x325   : > { %v1314_v46 = vpop.f32.mrb[10].mxu0 }
 0x326   : > { %1679 = vst.msk [vmem:[%s3332_s22 + $0x2] sm:$0x1] %vm1676_vm3, %v1314_v46  ;;  %v2236_v47 = vpop.f32.mrb[11].mxu0 }
 0x329   : > { %v1384_v23 = vpop.f32.mrb[10].mxu1 }
 0x32a   : > { %1680 = vst.msk [vmem:[%s3332_s22 + $0x3] sm:$0x1] %vm1676_vm3, %v1384_v23  ;;  %v2271_v27 = vpop.f32.mrb[11].mxu1 }
 0x32b   : > { %2746 = shalt.err (!%p2743_p3)
}
 0x32c   : > { %s2747_s10 = scalar_lea.hbm %s3348_s29, 128  ;;  %s2751_s14 = scalar_lea.hbm %s3446_s4, 256 }
 0x32d   : > { %p2748_p4 = scmp.ne.s32.totalorder %s3348_s29, %s2747_s10  ;;  %p2752_p9 = scmp.lt.u32.totalorder %s3348_s29, %s3446_s4 }
 0x32e   : > { %p2753_p10 = scmp.lt.u32.totalorder %s2751_s14, %s2747_s10  ;;  %p2755_p12 = scmp.lt.u32.totalorder %s2747_s10, %s3348_s29 }
 0x32f   : > { %p2749_p7 = pnand %p2748_p4, %p2899_p5 }
 0x330   : > { %p2754_p11 = por %p2753_p10, %p2752_p9 }
 0x331   : > { %p2750_p8 = pneg %p2749_p7 }
 0x332   : > { %p2756_p13 = por %p2755_p12, %p2754_p11 }
 0x334   : > { %p2757_p0 = pnand %p2756_p13, %p2750_p8 }
 0x336   : > { %2760 = shalt.err (!%p2757_p0)
}
 0x337   : > { %s2833_s28 = smov 16   ;;  %s2834_s6 = smov 1  }
 0x338   : > { %2653 = dma.vmem_to_hbm [thread:$0]  (%p2899_p5), %s3351_s30, 128, %s3348_s29, %s1691_s5, %s2833_s28, %s2833_s28, %s2834_s6  }
 0x339   : > { %s1704_s7 = sshll.u32 %s3332_s22, 4  ;;  %s3392_s29 = scalar_lea.hbm %s3445_s3, %s1866_s23  ;;  %s3394_s7 = int_to_ptr.vmem [resolvable:$true] %s1704_s7 }
 0x33a   : > { %s1686_s30 = scalar_lea.sflag [#allocation3], %s3128_s13  ;;  %s2761_s5 = scalar_lea.vmem %s3394_s7, 128 }
 0x33b   : > { %p2762_p1 = scmp.ne.s32.totalorder %s3394_s7, %s2761_s5  ;;  %s2835_s19 = smov [#allocation2]  }
 0x33c   : > { %s2765_s10 = sshll.u32 %s2835_s19, 4  ;;  %s2766_s10 = int_to_ptr.vmem [resolvable:$false] %s2765_s10 }
 0x33d   : > { %p2763_p2 = pnand %p2762_p1, %p2899_p5  ;;  %s2767_s23 = scalar_lea.vmem %s2766_s10, 256 }
 0x33e   : > { %p2768_p4 = scmp.lt.s32.totalorder %s3394_s7, %s2766_s10  ;;  %p2769_p7 = scmp.lt.s32.totalorder %s2767_s23, %s2761_s5 }
 0x33f   : > { %p2764_p3 = pneg %p2763_p2 }
 0x340   : > { %p2770_p8 = por %p2769_p7, %p2768_p4 }
 0x342   : > { %p2771_p9 = pnand %p2770_p8, %p2764_p3 }
 0x345   : > { %v1454_v48 = vpop.f32.mrb[12].mxu0 }
 0x346   : > { %1681 = vst.msk [vmem:[%s3332_s22 + $0x4] sm:$0x1] %vm1676_vm3, %v1454_v48  ;;  %v2306_v49 = vpop.f32.mrb[13].mxu0 }
 0x349   : > { %v1524_v50 = vpop.f32.mrb[12].mxu1 }
 0x34a   : > { %1682 = vst.msk [vmem:[%s3332_s22 + $0x5] sm:$0x1] %vm1676_vm3, %v1524_v50  ;;  %v2341_v51 = vpop.f32.mrb[13].mxu1 }
 0x3a7   : > { %v1594_v52 = vpop.f32.mrb[14].mxu0 }
 0x3a8   : > { %1683 = vst.msk [vmem:[%s3332_s22 + $0x6] sm:$0x1] %vm1676_vm3, %v1594_v52  ;;  %v2376_v53 = vpop.f32.mrb[15].mxu0 }
 0x3ab   : > { %v1664_v54 = vpop.f32.mrb[14].mxu1 }
 0x3ac   : > { %1684 = vst.msk [vmem:[%s3332_s22 + $0x7] sm:$0x1] %vm1676_vm3, %v1664_v54  ;;  %v2411_v55 = vpop.f32.mrb[15].mxu1 }
 0x3ad   : > { %2774 = shalt.err (!%p2771_p9)
}
 0x3ae   : > { %s2775_s22 = scalar_lea.hbm %s3392_s29, 128  ;;  %s2779_s14 = scalar_lea.hbm %s3445_s3, 256 }
 0x3af   : > { %p2776_p10 = scmp.ne.s32.totalorder %s3392_s29, %s2775_s22  ;;  %p2780_p13 = scmp.lt.u32.totalorder %s3392_s29, %s3445_s3 }
 0x3b0   : > { %p2781_p0 = scmp.lt.u32.totalorder %s2779_s14, %s2775_s22  ;;  %p2783_p2 = scmp.lt.u32.totalorder %s2775_s22, %s3392_s29 }
 0x3b1   : > { %p2777_p11 = pnand %p2776_p10, %p2899_p5 }
 0x3b2   : > { %p2782_p1 = por %p2781_p0, %p2780_p13 }
 0x3b3   : > { %p2778_p12 = pneg %p2777_p11 }
 0x3b4   : > { %p2784_p3 = por %p2783_p2, %p2782_p1 }
 0x3b6   : > { %p2785_p4 = pnand %p2784_p3, %p2778_p12 }
 0x3b8   : > { %2788 = shalt.err (!%p2785_p4)
}
 0x3b9   : > { %2652 = dma.vmem_to_hbm [thread:$0]  (%p2899_p5), %s3394_s7, 128, %s3392_s29, %s1686_s30, %s2833_s28, %s2833_s28, %s2834_s6  }
 0x3ba PF: > { %p2663_p7 = scmp.ge.s32.totalorder %s2827_s18, 2  ;;  %s1735_s8 = sand.u32 1, %s2815_s15  }
 0x3bb   : > { %s1736_s9 = scalar_lea.sflag [#allocation3], %s1735_s8 }
 0x3bc   : > { %p2657_p8 = pnand %p2663_p7, %p2903_p6 }
 0x3be   : > { %2806 = dma.done.wait (!%p2657_p8), %s1736_s9, 128  }
 0x3bf   : > { %2808 = vsyncadd (!%p2657_p8), %s1736_s9, 4294967168  ;;  %s1745_s25 = scalar_lea.sflag [#allocation5], %s1735_s8 }
 0x3c0   : > { %2810 = dma.done.wait (!%p2657_p8), %s1745_s25, 128  }
 0x3c1   : > { %2812 = vsyncadd (!%p2657_p8), %s1745_s25, 4294967168  ;;  %p18_p5 = scmp.ge.s32.totalorder %s2886_s21, 4   ;;  %s3449_s15 = smov %s2819_s16 }
 0x3c2   : > { %s3450_s16 = smov %s2823_s17  ;;  %s3451_s17 = smov %s2897_s24 }
 0x3c3   : > { %s3452_s18 = smov %s2886_s21  ;;  %20 = sbr.rel (!%p18_p5) target bundleno = 5 (0x5), region = 90 }
 0x3ca   :  { %1750 = vsyncpa [#allocation3], 1 }
 0x3cb   :  { %1752 = vsyncpa [#allocation3 + $0x1], 1 }
 0x3cc   :  { %1753 = vsyncpa [#allocation5], 1 }
 0x3cd   :  { %1755 = vsyncpa [#allocation5 + $0x1], 1 }

</bundles_post_ra>
